<compile_context>
chip_gen: v6e
topology: v6e:2x2x1
jax: 0.10.0
libtpu: 0.0.40
codegen_flags: <defaults>
</compile_context>

<pallas_src>
import functools

import jax
import jax.numpy as jnp
import numpy as np
from jax import lax
from jax.experimental import pallas as pl
from jax.experimental.pallas import tpu as pltpu


def fused_conv_pool_kernel(img_ref, wtaps_ref, bias_ref, out_ref, *, H, W, C):
    """Per-batch fused 3x3 SAME conv + bias + ReLU + row-sum.

    img_ref  : (H+2, (W+2)*C) f32   zero-padded normalized image,
               channel-minor: img[h, w*C + c] = xn_pad[c, h, w]
    wtaps_ref: (9, W*C, W*Cout) bf16 per-tap block-diagonal conv weights
    bias_ref : (1, W*Cout) f32      conv bias tiled over width
    out_ref  : (1, W*Cout) f32      sum_h relu(conv)[h, w*Cout + o]
    """
    WC = W * C
    img = img_ref[...]                                     # (H+2, (W+2)*C) f32
    acc = None
    for t in range(9):                                     # static unroll, 9 taps
        dy, dx = divmod(t, 3)
        tap = img[dy:dy + H, dx * C:dx * C + WC].astype(jnp.bfloat16)  # (H, W*C)
        contrib = jnp.dot(tap, wtaps_ref[t],
                          preferred_element_type=jnp.float32)          # (H, W*Cout)
        acc = contrib if acc is None else acc + contrib
    conv = jnp.maximum(acc + bias_ref[...], 0.0)           # bias + ReLU, f32
    out_ref[...] = jnp.sum(conv, axis=0, keepdims=True)    # (1, W*Cout), lane-dense


def robustness_container_forward(x, params):
    """Returns `pred` (the container discards `imgs`)."""
    mean, std, wconv, bconv, wfc, bfc = params
    B, C, H, W = x.shape
    Cout = wconv.shape[0]
    num_classes = wfc.shape[0]
    Hp, Wp = H + 2, W + 2
    WC, WCout = W * C, W * Cout

    # ---- tiny XLA prologue (single fused pass, ~10 KiB total HBM traffic):
    #      InputNormalize + SAME zero-pad + channel-minor relayout.
    xn = (x - mean[None, :, None, None]) / std[None, :, None, None]
    img = jnp.transpose(xn, (0, 2, 3, 1))                   # (B, H, W, C)
    img = jnp.pad(img, ((0, 0), (1, 1), (1, 1), (0, 0)))    # (B, Hp, Wp, C)
    img = img.reshape(B, Hp, Wp * C)                        # (B, Hp, Wp*C) f32

    # ---- per-tap block-diagonal conv weights:
    #      wtaps[t, w*C + c, v*Cout + o] = delta(w, v) * wconv[o, c, dy, dx]
    wt = jnp.transpose(wconv, (2, 3, 1, 0)).reshape(9, C, Cout)   # (t, c, o)
    eye_w = jnp.eye(W, dtype=wconv.dtype)
    wtaps = jnp.einsum('wv,tco->twcvo', eye_w, wt)
    wtaps = wtaps.reshape(9, WC, WCout).astype(jnp.bfloat16)
    bias_row = jnp.tile(bconv, W).reshape(1, WCout)               # f32

    kernel = functools.partial(fused_conv_pool_kernel, H=H, W=W, C=C)

    # grid = (B,): whole spatial extent per step; batch axis "parallel"
    # (covers both v7x TensorCores whenever B >= 2).
    hsum = pl.pallas_call(
        kernel,
        out_shape=jax.ShapeDtypeStruct((B, 1, WCout), jnp.float32),
        grid=(B,),
        in_specs=[
            pl.BlockSpec((pl.Squeezed(), Hp, Wp * C), lambda b: (b, 0, 0)),
            pl.BlockSpec((9, WC, WCout), lambda b: (0, 0, 0)),
            pl.BlockSpec((1, WCout), lambda b: (0, 0)),
        ],
        out_specs=pl.BlockSpec((pl.Squeezed(), 1, WCout), lambda b: (b, 0, 0)),
        compiler_params=pltpu.CompilerParams(
            dimension_semantics=("parallel",)),
        cost_estimate=pl.CostEstimate(
            flops=int(2 * B * 9 * H * WC * WCout),
            transcendentals=0,
            bytes_accessed=int(B * Hp * Wp * C * 4 + 9 * WC * WCout * 2
                               + WCout * 4 + B * WCout * 4)),
    )(img, wtaps, bias_row)

    # ---- tiny XLA epilogue: finish the global-average-pool in f32 and run FC.
    pooled = hsum[:, 0, :].reshape(B, W, Cout).sum(axis=1) / float(H * W)
    logits = pooled @ wfc.T + bfc[None, :]
    return logits


def reference_forward(x, params):
    """Pure-JAX f32 reference of the same robust model (for validation)."""
    mean, std, wconv, bconv, wfc, bfc = params
    xn = (x - mean[None, :, None, None]) / std[None, :, None, None]
    conv = lax.conv_general_dilated(
        xn, wconv, window_strides=(1, 1), padding="SAME",
        dimension_numbers=("NCHW", "OIHW", "NCHW"))
    conv = jnp.maximum(conv + bconv[None, :, None, None], 0.0)
    pooled = conv.mean(axis=(2, 3))
    return pooled @ wfc.T + bfc[None, :]


def make_params(key, C=4, Cout=8, num_classes=10):
    k1, k2, k3, k4 = jax.random.split(key, 4)
    mean = jnp.array([0.485, 0.456, 0.406, 0.5][:C], dtype=jnp.float32)
    std = jnp.array([0.229, 0.224, 0.225, 0.25][:C], dtype=jnp.float32)
    wconv = 0.1 * jax.random.normal(k1, (Cout, C, 3, 3), dtype=jnp.float32)
    bconv = 0.1 * jax.random.normal(k2, (Cout,), dtype=jnp.float32)
    wfc = 0.1 * jax.random.normal(k3, (num_classes, Cout), dtype=jnp.float32)
    bfc = 0.1 * jax.random.normal(k4, (num_classes,), dtype=jnp.float32)
    return (mean, std, wconv, bconv, wfc, bfc)


if __name__ == "__main__":
    key = jax.random.PRNGKey(0)
    kx, kp = jax.random.split(key)
    # small shapes: batch=2, channels=4, spatial=16x16
    x = jax.random.uniform(kx, (2, 4, 16, 16), dtype=jnp.float32)
    params = make_params(kp)

    fwd = jax.jit(robustness_container_forward)
    pred = jax.block_until_ready(fwd(x, params))

    ref = jax.block_until_ready(reference_forward(x, params))
    assert pred.shape == (2, 10)
    # bf16 conv operands with f32 accumulation; pooled/FC stay f32.
    np.testing.assert_allclose(np.asarray(pred), np.asarray(ref),
                               rtol=2e-2, atol=2e-2)
    print("KERNEL_OK")
</pallas_src>

<mosaic_0001>
module attributes {stable_mosaic.version = 11 : i64} {
  func.func @fused_conv_pool_kernel(%arg0: i32, %arg1: memref<1x18x72xf32, #tpu.memory_space<vmem>>, %arg2: memref<9x64x128xbf16, #tpu.memory_space<vmem>>, %arg3: memref<1x128xf32, #tpu.memory_space<vmem>>, %arg4: memref<1x1x128xf32, #tpu.memory_space<vmem>>) attributes {dimension_semantics = [#tpu.dimension_semantics<parallel>], iteration_bounds = array<i64: 2>, scalar_prefetch = 0 : i64, scratch_operands = 0 : i64, tpu.core_type = #tpu.core_type<tc>, window_params = [{transform_indices = @transform_0, window_bounds = array<i64: 1, 18, 72>}, {pipeline_mode = #tpu.pipeline_mode<synchronous>, transform_indices = @transform_1, window_bounds = array<i64: 9, 64, 128>}, {pipeline_mode = #tpu.pipeline_mode<synchronous>, transform_indices = @transform_2, window_bounds = array<i64: 1, 128>}, {transform_indices = @transform_3, window_bounds = array<i64: 1, 1, 128>}]} {
    %c0 = arith.constant 0 : index
    %c0_0 = arith.constant 0 : index
    %c0_1 = arith.constant 0 : index
    %0 = vector.load %arg1[%c0, %c0_0, %c0_1] : memref<1x18x72xf32, #tpu.memory_space<vmem>>, vector<1x18x72xf32>
    %1 = vector.shape_cast %0 : vector<1x18x72xf32> to vector<18x72xf32>
    %2 = vector.extract_strided_slice %1 {offsets = [0, 0], sizes = [16, 64], strides = [1, 1]} : vector<18x72xf32> to vector<16x64xf32>
    %3 = arith.truncf %2 : vector<16x64xf32> to vector<16x64xbf16>
    %c0_2 = arith.constant 0 : index
    %c0_3 = arith.constant 0 : index
    %c0_4 = arith.constant 0 : index
    %4 = vector.load %arg2[%c0_2, %c0_3, %c0_4] : memref<9x64x128xbf16, #tpu.memory_space<vmem>>, vector<1x64x128xbf16>
    %5 = vector.shape_cast %4 : vector<1x64x128xbf16> to vector<64x128xbf16>
    %cst = arith.constant dense<0.000000e+00> : vector<16x128xf32>
    %6 = tpu.matmul %3, %5, %cst {dimension_numbers = #tpu.dot_dimension_numbers<[1], [0], [0], [1], [0, 0, 1, 1], [], []>} : vector<16x64xbf16>, vector<64x128xbf16>, vector<16x128xf32> -> vector<16x128xf32>
    %7 = vector.extract_strided_slice %1 {offsets = [0, 4], sizes = [16, 64], strides = [1, 1]} : vector<18x72xf32> to vector<16x64xf32>
    %8 = arith.truncf %7 : vector<16x64xf32> to vector<16x64xbf16>
    %c1 = arith.constant 1 : index
    %c0_5 = arith.constant 0 : index
    %c0_6 = arith.constant 0 : index
    %9 = vector.load %arg2[%c1, %c0_5, %c0_6] : memref<9x64x128xbf16, #tpu.memory_space<vmem>>, vector<1x64x128xbf16>
    %10 = vector.shape_cast %9 : vector<1x64x128xbf16> to vector<64x128xbf16>
    %cst_7 = arith.constant dense<0.000000e+00> : vector<16x128xf32>
    %11 = tpu.matmul %8, %10, %cst_7 {dimension_numbers = #tpu.dot_dimension_numbers<[1], [0], [0], [1], [0, 0, 1, 1], [], []>} : vector<16x64xbf16>, vector<64x128xbf16>, vector<16x128xf32> -> vector<16x128xf32>
    %12 = arith.addf %6, %11 : vector<16x128xf32>
    %13 = vector.extract_strided_slice %1 {offsets = [0, 8], sizes = [16, 64], strides = [1, 1]} : vector<18x72xf32> to vector<16x64xf32>
    %14 = arith.truncf %13 : vector<16x64xf32> to vector<16x64xbf16>
    %c2 = arith.constant 2 : index
    %c0_8 = arith.constant 0 : index
    %c0_9 = arith.constant 0 : index
    %15 = vector.load %arg2[%c2, %c0_8, %c0_9] : memref<9x64x128xbf16, #tpu.memory_space<vmem>>, vector<1x64x128xbf16>
    %16 = vector.shape_cast %15 : vector<1x64x128xbf16> to vector<64x128xbf16>
    %cst_10 = arith.constant dense<0.000000e+00> : vector<16x128xf32>
    %17 = tpu.matmul %14, %16, %cst_10 {dimension_numbers = #tpu.dot_dimension_numbers<[1], [0], [0], [1], [0, 0, 1, 1], [], []>} : vector<16x64xbf16>, vector<64x128xbf16>, vector<16x128xf32> -> vector<16x128xf32>
    %18 = arith.addf %12, %17 : vector<16x128xf32>
    %19 = vector.extract_strided_slice %1 {offsets = [1, 0], sizes = [16, 64], strides = [1, 1]} : vector<18x72xf32> to vector<16x64xf32>
    %20 = arith.truncf %19 : vector<16x64xf32> to vector<16x64xbf16>
    %c3 = arith.constant 3 : index
    %c0_11 = arith.constant 0 : index
    %c0_12 = arith.constant 0 : index
    %21 = vector.load %arg2[%c3, %c0_11, %c0_12] : memref<9x64x128xbf16, #tpu.memory_space<vmem>>, vector<1x64x128xbf16>
    %22 = vector.shape_cast %21 : vector<1x64x128xbf16> to vector<64x128xbf16>
    %cst_13 = arith.constant dense<0.000000e+00> : vector<16x128xf32>
    %23 = tpu.matmul %20, %22, %cst_13 {dimension_numbers = #tpu.dot_dimension_numbers<[1], [0], [0], [1], [0, 0, 1, 1], [], []>} : vector<16x64xbf16>, vector<64x128xbf16>, vector<16x128xf32> -> vector<16x128xf32>
    %24 = arith.addf %18, %23 : vector<16x128xf32>
    %25 = vector.extract_strided_slice %1 {offsets = [1, 4], sizes = [16, 64], strides = [1, 1]} : vector<18x72xf32> to vector<16x64xf32>
    %26 = arith.truncf %25 : vector<16x64xf32> to vector<16x64xbf16>
    %c4 = arith.constant 4 : index
    %c0_14 = arith.constant 0 : index
    %c0_15 = arith.constant 0 : index
    %27 = vector.load %arg2[%c4, %c0_14, %c0_15] : memref<9x64x128xbf16, #tpu.memory_space<vmem>>, vector<1x64x128xbf16>
    %28 = vector.shape_cast %27 : vector<1x64x128xbf16> to vector<64x128xbf16>
    %cst_16 = arith.constant dense<0.000000e+00> : vector<16x128xf32>
    %29 = tpu.matmul %26, %28, %cst_16 {dimension_numbers = #tpu.dot_dimension_numbers<[1], [0], [0], [1], [0, 0, 1, 1], [], []>} : vector<16x64xbf16>, vector<64x128xbf16>, vector<16x128xf32> -> vector<16x128xf32>
    %30 = arith.addf %24, %29 : vector<16x128xf32>
    %31 = vector.extract_strided_slice %1 {offsets = [1, 8], sizes = [16, 64], strides = [1, 1]} : vector<18x72xf32> to vector<16x64xf32>
    %32 = arith.truncf %31 : vector<16x64xf32> to vector<16x64xbf16>
    %c5 = arith.constant 5 : index
    %c0_17 = arith.constant 0 : index
    %c0_18 = arith.constant 0 : index
    %33 = vector.load %arg2[%c5, %c0_17, %c0_18] : memref<9x64x128xbf16, #tpu.memory_space<vmem>>, vector<1x64x128xbf16>
    %34 = vector.shape_cast %33 : vector<1x64x128xbf16> to vector<64x128xbf16>
    %cst_19 = arith.constant dense<0.000000e+00> : vector<16x128xf32>
    %35 = tpu.matmul %32, %34, %cst_19 {dimension_numbers = #tpu.dot_dimension_numbers<[1], [0], [0], [1], [0, 0, 1, 1], [], []>} : vector<16x64xbf16>, vector<64x128xbf16>, vector<16x128xf32> -> vector<16x128xf32>
    %36 = arith.addf %30, %35 : vector<16x128xf32>
    %37 = vector.extract_strided_slice %1 {offsets = [2, 0], sizes = [16, 64], strides = [1, 1]} : vector<18x72xf32> to vector<16x64xf32>
    %38 = arith.truncf %37 : vector<16x64xf32> to vector<16x64xbf16>
    %c6 = arith.constant 6 : index
    %c0_20 = arith.constant 0 : index
    %c0_21 = arith.constant 0 : index
    %39 = vector.load %arg2[%c6, %c0_20, %c0_21] : memref<9x64x128xbf16, #tpu.memory_space<vmem>>, vector<1x64x128xbf16>
    %40 = vector.shape_cast %39 : vector<1x64x128xbf16> to vector<64x128xbf16>
    %cst_22 = arith.constant dense<0.000000e+00> : vector<16x128xf32>
    %41 = tpu.matmul %38, %40, %cst_22 {dimension_numbers = #tpu.dot_dimension_numbers<[1], [0], [0], [1], [0, 0, 1, 1], [], []>} : vector<16x64xbf16>, vector<64x128xbf16>, vector<16x128xf32> -> vector<16x128xf32>
    %42 = arith.addf %36, %41 : vector<16x128xf32>
    %43 = vector.extract_strided_slice %1 {offsets = [2, 4], sizes = [16, 64], strides = [1, 1]} : vector<18x72xf32> to vector<16x64xf32>
    %44 = arith.truncf %43 : vector<16x64xf32> to vector<16x64xbf16>
    %c7 = arith.constant 7 : index
    %c0_23 = arith.constant 0 : index
    %c0_24 = arith.constant 0 : index
    %45 = vector.load %arg2[%c7, %c0_23, %c0_24] : memref<9x64x128xbf16, #tpu.memory_space<vmem>>, vector<1x64x128xbf16>
    %46 = vector.shape_cast %45 : vector<1x64x128xbf16> to vector<64x128xbf16>
    %cst_25 = arith.constant dense<0.000000e+00> : vector<16x128xf32>
    %47 = tpu.matmul %44, %46, %cst_25 {dimension_numbers = #tpu.dot_dimension_numbers<[1], [0], [0], [1], [0, 0, 1, 1], [], []>} : vector<16x64xbf16>, vector<64x128xbf16>, vector<16x128xf32> -> vector<16x128xf32>
    %48 = arith.addf %42, %47 : vector<16x128xf32>
    %49 = vector.extract_strided_slice %1 {offsets = [2, 8], sizes = [16, 64], strides = [1, 1]} : vector<18x72xf32> to vector<16x64xf32>
    %50 = arith.truncf %49 : vector<16x64xf32> to vector<16x64xbf16>
    %c8 = arith.constant 8 : index
    %c0_26 = arith.constant 0 : index
    %c0_27 = arith.constant 0 : index
    %51 = vector.load %arg2[%c8, %c0_26, %c0_27] : memref<9x64x128xbf16, #tpu.memory_space<vmem>>, vector<1x64x128xbf16>
    %52 = vector.shape_cast %51 : vector<1x64x128xbf16> to vector<64x128xbf16>
    %cst_28 = arith.constant dense<0.000000e+00> : vector<16x128xf32>
    %53 = tpu.matmul %50, %52, %cst_28 {dimension_numbers = #tpu.dot_dimension_numbers<[1], [0], [0], [1], [0, 0, 1, 1], [], []>} : vector<16x64xbf16>, vector<64x128xbf16>, vector<16x128xf32> -> vector<16x128xf32>
    %54 = arith.addf %48, %53 : vector<16x128xf32>
    %c0_29 = arith.constant 0 : index
    %c0_30 = arith.constant 0 : index
    %55 = vector.load %arg3[%c0_29, %c0_30] : memref<1x128xf32, #tpu.memory_space<vmem>>, vector<1x128xf32>
    %56 = vector.broadcast %55 : vector<1x128xf32> to vector<16x128xf32>
    %57 = arith.addf %54, %56 : vector<16x128xf32>
    %cst_31 = arith.constant 0.000000e+00 : f32
    %58 = vector.broadcast %cst_31 : f32 to vector<16x128xf32>
    %59 = arith.maximumf %57, %58 : vector<16x128xf32>
    %cst_32 = arith.constant dense<0.000000e+00> : vector<128xf32>
    %60 = vector.multi_reduction <add>, %59, %cst_32 [0] : vector<16x128xf32> to vector<128xf32>
    %61 = vector.shape_cast %60 : vector<128xf32> to vector<1x128xf32>
    %c0_33 = arith.constant 0 : index
    %c0_34 = arith.constant 0 : index
    %c0_35 = arith.constant 0 : index
    %62 = vector.load %arg4[%c0_33, %c0_34, %c0_35] : memref<1x1x128xf32, #tpu.memory_space<vmem>>, vector<1x1x128xf32>
    %63 = vector.shape_cast %62 : vector<1x1x128xf32> to vector<1x128xf32>
    %64 = vector.shape_cast %61 : vector<1x128xf32> to vector<1x1x128xf32>
    tpu.vector_store %arg4[%c0_33, %c0_34, %c0_35], %64 {strides = array<i32>} : memref<1x1x128xf32, #tpu.memory_space<vmem>>, vector<1x1x128xf32>,
    return
  }
  func.func @transform_0(%arg0: i32) -> (i32, i32, i32) {
    %c0_i32 = arith.constant 0 : i32
    %c0_i32_0 = arith.constant 0 : i32
    %c0_i32_1 = arith.constant 0 : i32
    return %arg0, %c0_i32, %c0_i32_0 : i32, i32, i32
  }
  func.func @transform_1(%arg0: i32) -> (i32, i32, i32) {
    %c0_i32 = arith.constant 0 : i32
    %c0_i32_0 = arith.constant 0 : i32
    %c0_i32_1 = arith.constant 0 : i32
    %c0_i32_2 = arith.constant 0 : i32
    return %c0_i32, %c0_i32_0, %c0_i32_1 : i32, i32, i32
  }
  func.func @transform_2(%arg0: i32) -> (i32, i32) {
    %c0_i32 = arith.constant 0 : i32
    %c0_i32_0 = arith.constant 0 : i32
    %c0_i32_1 = arith.constant 0 : i32
    return %c0_i32, %c0_i32_0 : i32, i32
  }
  func.func @transform_3(%arg0: i32) -> (i32, i32, i32) {
    %c0_i32 = arith.constant 0 : i32
    %c0_i32_0 = arith.constant 0 : i32
    %c0_i32_1 = arith.constant 0 : i32
    return %arg0, %c0_i32, %c0_i32_0 : i32, i32, i32
  }
}

</mosaic_0001>

<bundles_post_ra>
// kernel: tile.8
= control target key start
LH: loop header
LB: loop body
LE: loop exit
PB: predicated region body
PF: predicated region fallthrough
CT: control target
= control target key end

     0   :  { %s28_s0 = inlined_call_operand.vmem [shape: f32[8], index: 0, kind: input, shape index: {}]   ;;  %s29_s1 = inlined_call_operand.vmem [shape: f32[16,8], index: 1, kind: output, shape index: {}]  }
   0x1   :  { %v4_v0 = vld [vmem:[%s28_s0] ss:$0 sm:$0xff] }
   0x2   :  { %5 = vst [vmem:[%s29_s1] sm:$0xff] %v4_v0  ;;  %8 = vst [vmem:[%s29_s1 + $0x8] sm:$0xff] %v4_v0 }

// kernel: tile.9
= control target key start
LH: loop header
LB: loop body
LE: loop exit
PB: predicated region body
PF: predicated region fallthrough
CT: control target
= control target key end

     0   :  { %s133_s10 = smov 120   ;;  %s134_s11 = smov 104   ;;  %vm3_vm0 = vcmask 64512   ;;  %vm9_vm1 = vcmask 1048512   ;;  %vm15_vm2 = vcmask 982912   ;;  %vm21_vm3 = vcmask 917312   ;;  %s209_s0 = inlined_call_operand.vmem [shape: f32[16,8], index: 0, kind: input, shape index: {}]   ;;  %s210_s1 = inlined_call_operand.vmem [shape: f32[1,128], index: 1, kind: output, shape index: {}]  }
   0x1   :  { %v103_v0 = vld [vmem:[%s209_s0 + $0xf] sm:$0x1]   ;;  %v105_v1 = vld [vmem:[%s209_s0 + $0xd] sm:$0x1]   ;;  %v104_v2 = vld [vmem:[%s209_s0 + $0xe] sm:$0x1]  }
   0x2   :  { %7 = vrot.lane.b32.xlu0 %v103_v0, %s133_s10  ;;  %19 = vrot.lane.b32.xlu1 %v105_v1, %s134_s11  ;;  %v106_v3 = vld [vmem:[%s209_s0 + $0xc] sm:$0x1]   ;;  %s135_s16 = smov 112   ;;  %s136_s17 = smov 96   ;;  %v107_v4 = vld [vmem:[%s209_s0 + $0xb] sm:$0x1]  }
   0x3   :  { %v108_v5 = vld [vmem:[%s209_s0 + $0xa] sm:$0x1]   ;;  %v2_v6 = vld [vmem:[%s209_s0] sm:$0x1]   ;;  %s137_s24 = smov 88   ;;  %s138_s25 = smov 80  }
   0x4   :  { %4 = vst.msk [vmem:[#allocation0] sm:$0x1] %vm3_vm0, %v2_v6   ;;  %v109_v7 = vld [vmem:[%s209_s0 + $0x9] sm:$0x1]   ;;  %v110_v8 = vld [vmem:[%s209_s0 + $0x8] sm:$0x1]  }
   0x5   :  { %s139_s30 = smov 72   ;;  %s140_s2 = smov 64   ;;  %v111_v9 = vld [vmem:[%s209_s0 + $0x7] sm:$0x1]   ;;  %v112_v10 = vld [vmem:[%s209_s0 + $0x6] sm:$0x1]  }
   0x6   :  { %13 = vrot.lane.b32.xlu0 %v104_v2, %s135_s16  ;;  %25 = vrot.lane.b32.xlu1 %v106_v3, %s136_s17  ;;  %s141_s7 = smov 56   ;;  %s142_s8 = smov 48   ;;  %v113_v11 = vld [vmem:[%s209_s0 + $0x5] sm:$0x1]   ;;  %v114_v12 = vld [vmem:[%s209_s0 + $0x4] sm:$0x1]  }
   0x7   :  { %s143_s13 = smov 40   ;;  %s144_s14 = smov 32   ;;  %v115_v13 = vld [vmem:[%s209_s0 + $0x3] sm:$0x1]   ;;  %v116_v14 = vld [vmem:[%s209_s0 + $0x2] sm:$0x1]  }
   0x8   :  { %s145_s19 = smov 24   ;;  %s146_s20 = smov 16   ;;  %v117_v15 = vld [vmem:[%s209_s0 + $0x1] sm:$0x1]   ;;  %vm27_vm4 = vcmask 851712   ;;  %vm33_vm5 = vcmask 786112  }
   0x9   :  { %s147_s0 = smov 8   ;;  %vm39_vm6 = vcmask 720512   ;;  %vm45_vm7 = vcmask 654912   ;;  %vm51_vm8 = vcmask 589312   ;;  %vm57_vm9 = vcmask 523712  }
   0xa   :  { %31 = vrot.lane.b32.xlu0 %v107_v4, %s137_s24  ;;  %37 = vrot.lane.b32.xlu1 %v108_v5, %s138_s25  ;;  %vm63_vm10 = vcmask 458112   ;;  %vm69_vm11 = vcmask 392512   ;;  %vm75_vm12 = vcmask 326912   ;;  %vm81_vm13 = vcmask 261312  }
   0xb   :  { %vm87_vm14 = vcmask 195712   ;;  %vm93_vm15 = vcmask 130112  }
   0xe   :  { %43 = vrot.lane.b32.xlu0 %v109_v7, %s139_s30  ;;  %49 = vrot.lane.b32.xlu1 %v110_v8, %s140_s2 }
  0x12   :  { %55 = vrot.lane.b32.xlu0 %v111_v9, %s141_s7  ;;  %61 = vrot.lane.b32.xlu1 %v112_v10, %s142_s8 }
  0x16   :  { %67 = vrot.lane.b32.xlu0 %v113_v11, %s143_s13  ;;  %73 = vrot.lane.b32.xlu1 %v114_v12, %s144_s14 }
  0x1a   :  { %79 = vrot.lane.b32.xlu0 %v115_v13, %s145_s19  ;;  %85 = vrot.lane.b32.xlu1 %v116_v14, %s146_s20 }
  0x1e   :  { %91 = vrot.lane.b32.xlu0 %v117_v15, %s147_s0 }
  0x74   :  { %v8_v16 = vpop.permute.xlu0 %7   ;;  %v20_v17 = vpop.permute.xlu1 %19  }
  0x75   :  { %10 = vst.msk [vmem:[#allocation0] sm:$0x1] %vm9_vm1, %v8_v16  }
  0x78   :  { %v14_v18 = vpop.permute.xlu0 %13   ;;  %v26_v19 = vpop.permute.xlu1 %25  }
  0x79   :  { %16 = vst.msk [vmem:[#allocation0] sm:$0x1] %vm15_vm2, %v14_v18  }
  0x7a   :  { %22 = vst.msk [vmem:[#allocation0] sm:$0x1] %vm21_vm3, %v20_v17  }
  0x7b   :  { %28 = vst.msk [vmem:[#allocation0] sm:$0x1] %vm27_vm4, %v26_v19  }
  0x7c   :  { %v32_v20 = vpop.permute.xlu0 %31   ;;  %v38_v21 = vpop.permute.xlu1 %37  }
  0x7d   :  { %34 = vst.msk [vmem:[#allocation0] sm:$0x1] %vm33_vm5, %v32_v20  }
  0x7e   :  { %40 = vst.msk [vmem:[#allocation0] sm:$0x1] %vm39_vm6, %v38_v21  }
  0x80   :  { %v44_v22 = vpop.permute.xlu0 %43   ;;  %v50_v23 = vpop.permute.xlu1 %49  }
  0x81   :  { %46 = vst.msk [vmem:[#allocation0] sm:$0x1] %vm45_vm7, %v44_v22  }
  0x82   :  { %52 = vst.msk [vmem:[#allocation0] sm:$0x1] %vm51_vm8, %v50_v23  }
  0x84   :  { %v56_v24 = vpop.permute.xlu0 %55   ;;  %v62_v25 = vpop.permute.xlu1 %61  }
  0x85   :  { %58 = vst.msk [vmem:[#allocation0] sm:$0x1] %vm57_vm9, %v56_v24  }
  0x86   :  { %64 = vst.msk [vmem:[#allocation0] sm:$0x1] %vm63_vm10, %v62_v25  }
  0x88   :  { %v68_v26 = vpop.permute.xlu0 %67   ;;  %v74_v27 = vpop.permute.xlu1 %73  }
  0x89   :  { %70 = vst.msk [vmem:[#allocation0] sm:$0x1] %vm69_vm11, %v68_v26  }
  0x8a   :  { %76 = vst.msk [vmem:[#allocation0] sm:$0x1] %vm75_vm12, %v74_v27  }
  0x8c   :  { %v80_v28 = vpop.permute.xlu0 %79   ;;  %v86_v29 = vpop.permute.xlu1 %85  }
  0x8d   :  { %82 = vst.msk [vmem:[#allocation0] sm:$0x1] %vm81_vm13, %v80_v28  }
  0x8e   :  { %88 = vst.msk [vmem:[#allocation0] sm:$0x1] %vm87_vm14, %v86_v29  }
  0x90   :  { %v92_v30 = vpop.permute.xlu0 %91  }
  0x91   :  { %94 = vst.msk [vmem:[#allocation0] sm:$0x1] %vm93_vm15, %v92_v30  }
  0x98   :  { %v99_v31 = vld [vmem:[#allocation0] sm:$0x1] }
  0x99   :  { %102 = vst [vmem:[%s210_s1] sm:$0x1] %v99_v31 }

// kernel: squeeze.1
= control target key start
LH: loop header
LB: loop body
LE: loop exit
PB: predicated region body
PF: predicated region fallthrough
CT: control target
= control target key end

     0   :  { %s131_s8 = smov 104   ;;  %s132_s9 = smov 112   ;;  %vm8_vm0 = vcmask 64512   ;;  %s222_s0 = inlined_call_operand.vmem [shape: f32[2,128], index: 0, kind: input, shape index: {}]   ;;  %s223_s1 = inlined_call_operand.vmem [shape: f32[2,16,8], index: 1, kind: output, shape index: {}]  }
   0x1   :  { %v5_v0 = vld [vmem:[%s222_s0] sm:$0x3]  ;;  %s130_s0 = smov 120   ;;  %s133_s10 = smov 96  }
   0x2   :  { %6 = vst [vmem:[#allocation0] sm:$0x3] %v5_v0  ;;  %s134_s11 = smov 88   ;;  %s135_s12 = smov 80  }
   0x3   :  { %s136_s13 = smov 72   ;;  %s137_s14 = smov 64  }
   0x4   :  { %s138_s17 = smov 56   ;;  %s139_s18 = smov 48  }
   0x5   :  { %s140_s19 = smov 40   ;;  %s141_s20 = smov 32  }
   0x6   :  { %s142_s21 = smov 24   ;;  %s143_s22 = smov 16  }
   0x7   :  { %s144_s23 = smov 8  }
   0x9   :  { %v10_v1 = vld [vmem:[#allocation0] sm:$0x3]  }
   0xa   :  { %v22_v2 = vld [vmem:[#allocation0] sm:$0x3]   ;;  %11 = vrot.lane.b32.xlu0 %v10_v1, %s130_s0 }
   0xb   :  { %23 = vrot.lane.b32.xlu1 %v22_v2, %s131_s8  ;;  %v16_v3 = vld [vmem:[#allocation0] sm:$0x3]  }
   0xc   :  { %v28_v4 = vld [vmem:[#allocation0] sm:$0x3]  }
   0xd   :  { %v34_v5 = vld [vmem:[#allocation0] sm:$0x3]  }
   0xe   :  { %17 = vrot.lane.b32.xlu0 %v16_v3, %s132_s9  ;;  %v40_v6 = vld [vmem:[#allocation0] sm:$0x3]  }
   0xf   :  { %29 = vrot.lane.b32.xlu1 %v28_v4, %s133_s10  ;;  %v46_v7 = vld [vmem:[#allocation0] sm:$0x3]  }
  0x10   :  { %v52_v8 = vld [vmem:[#allocation0] sm:$0x3]  }
  0x11   :  { %v58_v9 = vld [vmem:[#allocation0] sm:$0x3]  }
  0x12   :  { %35 = vrot.lane.b32.xlu0 %v34_v5, %s134_s11  ;;  %v64_v10 = vld [vmem:[#allocation0] sm:$0x3]  }
  0x13   :  { %41 = vrot.lane.b32.xlu1 %v40_v6, %s135_s12  ;;  %v7_v11 = vld [vmem:[#allocation0] sm:$0x3]  }
  0x14   :  { %9 = vst.msk [vmem:[%s223_s1] ss:$16 sm:$0x3] %vm8_vm0, %v7_v11   ;;  %v70_v12 = vld [vmem:[#allocation0] sm:$0x3]  }
  0x15   :  { %v76_v13 = vld [vmem:[#allocation0] sm:$0x3]  }
  0x16   :  { %47 = vrot.lane.b32.xlu0 %v46_v7, %s136_s13  ;;  %v82_v14 = vld [vmem:[#allocation0] sm:$0x3]  }
  0x17   :  { %53 = vrot.lane.b32.xlu1 %v52_v8, %s137_s14  ;;  %v88_v15 = vld [vmem:[#allocation0] sm:$0x3]  }
  0x18   :  { %v94_v16 = vld [vmem:[#allocation0] sm:$0x3]  }
  0x1a   :  { %59 = vrot.lane.b32.xlu0 %v58_v9, %s138_s17 }
  0x1b   :  { %65 = vrot.lane.b32.xlu1 %v64_v10, %s139_s18 }
  0x1e   :  { %71 = vrot.lane.b32.xlu0 %v70_v12, %s140_s19 }
  0x1f   :  { %77 = vrot.lane.b32.xlu1 %v76_v13, %s141_s20 }
  0x22   :  { %83 = vrot.lane.b32.xlu0 %v82_v14, %s142_s21 }
  0x23   :  { %89 = vrot.lane.b32.xlu1 %v88_v15, %s143_s22 }
  0x26   :  { %95 = vrot.lane.b32.xlu0 %v94_v16, %s144_s23 }
  0x7c   :  { %v12_v17 = vpop.permute.xlu0 %11  }
  0x7d   :  { %v24_v18 = vpop.permute.xlu1 %23   ;;  %100 = vst.msk [vmem:[%s223_s1 + $0x1] ss:$16 sm:$0x3] %vm8_vm0, %v12_v17  }
  0x7e   :  { %102 = vst.msk [vmem:[%s223_s1 + $0x3] ss:$16 sm:$0x3] %vm8_vm0, %v24_v18  }
  0x80   :  { %v18_v19 = vpop.permute.xlu0 %17  }
  0x81   :  { %v30_v20 = vpop.permute.xlu1 %29   ;;  %101 = vst.msk [vmem:[%s223_s1 + $0x2] ss:$16 sm:$0x3] %vm8_vm0, %v18_v19  }
  0x82   :  { %103 = vst.msk [vmem:[%s223_s1 + $0x4] ss:$16 sm:$0x3] %vm8_vm0, %v30_v20  }
  0x84   :  { %v36_v21 = vpop.permute.xlu0 %35  }
  0x85   :  { %v42_v22 = vpop.permute.xlu1 %41   ;;  %104 = vst.msk [vmem:[%s223_s1 + $0x5] ss:$16 sm:$0x3] %vm8_vm0, %v36_v21  }
  0x86   :  { %105 = vst.msk [vmem:[%s223_s1 + $0x6] ss:$16 sm:$0x3] %vm8_vm0, %v42_v22  }
  0x88   :  { %v48_v23 = vpop.permute.xlu0 %47  }
  0x89   :  { %v54_v24 = vpop.permute.xlu1 %53   ;;  %106 = vst.msk [vmem:[%s223_s1 + $0x7] ss:$16 sm:$0x3] %vm8_vm0, %v48_v23  }
  0x8a   :  { %107 = vst.msk [vmem:[%s223_s1 + $0x8] ss:$16 sm:$0x3] %vm8_vm0, %v54_v24  }
  0x8c   :  { %v60_v25 = vpop.permute.xlu0 %59  }
  0x8d   :  { %v66_v26 = vpop.permute.xlu1 %65   ;;  %108 = vst.msk [vmem:[%s223_s1 + $0x9] ss:$16 sm:$0x3] %vm8_vm0, %v60_v25  }
  0x8e   :  { %109 = vst.msk [vmem:[%s223_s1 + $0xa] ss:$16 sm:$0x3] %vm8_vm0, %v66_v26  }
  0x90   :  { %v72_v27 = vpop.permute.xlu0 %71  }
  0x91   :  { %v78_v28 = vpop.permute.xlu1 %77   ;;  %110 = vst.msk [vmem:[%s223_s1 + $0xb] ss:$16 sm:$0x3] %vm8_vm0, %v72_v27  }
  0x92   :  { %111 = vst.msk [vmem:[%s223_s1 + $0xc] ss:$16 sm:$0x3] %vm8_vm0, %v78_v28  }
  0x94   :  { %v84_v29 = vpop.permute.xlu0 %83  }
  0x95   :  { %v90_v30 = vpop.permute.xlu1 %89   ;;  %112 = vst.msk [vmem:[%s223_s1 + $0xd] ss:$16 sm:$0x3] %vm8_vm0, %v84_v29  }
  0x96   :  { %113 = vst.msk [vmem:[%s223_s1 + $0xe] ss:$16 sm:$0x3] %vm8_vm0, %v90_v30  }
  0x98   :  { %v96_v31 = vpop.permute.xlu0 %95  }
  0x99   :  { %114 = vst.msk [vmem:[%s223_s1 + $0xf] ss:$16 sm:$0x3] %vm8_vm0, %v96_v31  }

// kernel: robustness_container_forward.1
= control target key start
LH: loop header
LB: loop body
LE: loop exit
PB: predicated region body
PF: predicated region fallthrough
CT: control target
= control target key end

     0   :  { %s1328_s12 = smov 0   ;;  %s1529_s0 = inlined_call_operand.vmem [shape: f32[2,18,72], index: 0, kind: input, shape index: {}]   ;;  %s1530_s1 = inlined_call_operand.vmem [shape: bf16[9,64,128], index: 1, kind: input, shape index: {}]   ;;  %s1531_s2 = inlined_call_operand.vmem [shape: f32[1,128], index: 2, kind: input, shape index: {}]   ;;  %s1532_s3 = inlined_call_operand.vmem [shape: f32[2,1,128], index: 3, kind: output, shape index: {}]  }
   0x1 LB: > { %s976_s13 = sadd.s32 4294967295, %s1302_s12   ;;  %p980_p0 = scmp.ge.s32.totalorder %s1302_s12, 1  ;;  %s1302_s12 = sphi %s1328_s12, %s13_s12  }
   0x2   : > { %p137_p1 = scmp.lt.s32.totalorder %s1302_s12, 3 }
   0x4   : > { %p138_p2 = pnand %p980_p0, %p137_p1 }
   0x5   : > { %p159_p3 = scmp.lt.s32.totalorder (!%p138_p2), %s976_s13, 1  ;;  %s1306_s30 = smov (!%p138_p2), 124  }
   0x6   : > { %141 = sbr.rel (%p138_p2) target bundleno = 416 (0x1a0), region = 32  ;;  %s1307_s8 = smov (!%p138_p2), 120  }
   0xb   : > { %v1304_v0 = vmov 0.0   ;;  %v1260_v1 = vld [vmem:[%s1530_s1 + $0x38] sm:$0xff]   ;;  %s1534_s13 = smov (!%p159_p3, %s976_s13), 1  ;;  %v1262_v3 = vld [vmem:[%s1530_s1 + $0x30] sm:$0xff]   ;;  %vm1305_vm0 = vmmov 0   ;;  %v1264_v5 = vld [vmem:[%s1530_s1 + $0x28] sm:$0xff]  }
   0xc   : > { %1139 = vmatprep.subr.bf16.mxu0 %v1304_v0  ;;  %1151 = vmatprep.subr.bf16.mxu1 %v1304_v0  ;;  %v1261_v2 = vld [vmem:[%s1530_s1 + $0x18] sm:$0xff]   ;;  %s1247_s20 = smul.u32 24, %s1534_s13  ;;  %v1263_v4 = vld [vmem:[%s1530_s1 + $0x10] sm:$0xff]   ;;  %vm420_vm1 = vsmask.f32 7424  ;;  %v1265_v11 = vld [vmem:[%s1530_s1 + $0x8] sm:$0xff]   ;;  %s166_s21 = scalar_lea.vmem %s1532_s3, %s1534_s13 }
   0xd   : > { %1140 = vmatpush3.bf16.msra.mxu0 %v1260_v1  ;;  %1152 = vmatpush3.bf16.msra.mxu1 %v1261_v2  ;;  %v1266_v15 = vld [vmem:[%s1530_s1 + $0x20] sm:$0xff]   ;;  %vm674_vm2 = vcmask 1046528   ;;  %vm216_vm3 = vcmask 523264   ;;  %v1269_v24 = vld [vmem:[%s1530_s1 + $0x78] sm:$0xff]   ;;  %v1271_v25 = vld [vmem:[%s1530_s1 + $0x70] sm:$0xff]  }
   0xe   : > { %1141 = vmatprep.subr.bf16.mxu0 %v1304_v0  ;;  %1153 = vmatprep.subr.bf16.mxu1 %v1304_v0  ;;  %s163_s25 = scalar_lea.vmem %s1529_s0, %s1247_s20  ;;  %v1267_v20 = vld [vmem:[%s1530_s1] sm:$0xff]   ;;  %v1273_v26 = vld [vmem:[%s1530_s1 + $0x68] sm:$0xff]   ;;  %v1277_v28 = vld [vmem:[%s1530_s1 + $0xb8] sm:$0xff]  }
   0xf   : > { %1147 = vmatprep.mubr.msk.bf16.mxu0 %vm1305_vm0, %v1304_v0  ;;  %1159 = vmatprep.mubr.msk.bf16.mxu1 %vm1305_vm0, %v1304_v0  ;;  %v168_v6 = vld [vmem:[%s163_s25] sm:$0xff]  ;;  %v169_v7 = vld [vmem:[%s163_s25 + $0x8] sm:$0xff]  ;;  %v170_v8 = vld [vmem:[%s163_s25 + $0x10] sm:$0x3] }
  0x10   : > { %v171_v9 = vpack.c.bf16 %v169_v7, %v168_v6  ;;  %v410_v10 = vpack.c.bf16 %v170_v8, %v170_v8  ;;  %v1275_v27 = vld [vmem:[%s1530_s1 + $0x60] sm:$0xff]   ;;  %v1279_v29 = vld [vmem:[%s1530_s1 + $0xb0] sm:$0xff]   ;;  %v1281_v30 = vld [vmem:[%s1530_s1 + $0xa8] sm:$0xff]  }
  0x11   : > { %1142 = vmatpush3.bf16.msra.mxu0 %v1262_v3  ;;  %1154 = vmatpush3.bf16.msra.mxu1 %v1263_v4  ;;  %v1283_v31 = vld [vmem:[%s1530_s1 + $0xa0] sm:$0xff]   ;;  %v1268_v32 = vld [vmem:[%s1530_s1 + $0x58] sm:$0xff]   ;;  %v1270_v34 = vld [vmem:[%s1530_s1 + $0x50] sm:$0xff]  }
  0x12   : > { %1143 = vmatprep.subr.bf16.mxu0 %v1304_v0  ;;  %1155 = vmatprep.subr.bf16.mxu1 %v1304_v0  ;;  %v421_v12 = vshrl.u32 %v171_v9, 16  ;;  %v423_v13 = vshll.u32 %v171_v9, 16  ;;  %v428_v14 = vshll.u32 %v410_v10, 16  ;;  %v675_v16 = vrot.slane %v171_v9, 1  ;;  %v1272_v35 = vld [vmem:[%s1530_s1 + $0x48] sm:$0xff]   ;;  %v1285_v37 = vld [vmem:[%s1530_s1 + $0xf8] sm:$0xff]  }
  0x13   : > { %190 = vrot.lane.b32.xlu0 %v171_v9, %s1306_s30  ;;  %v676_v17 = vrot.slane %v410_v10, 1  ;;  %v1274_v38 = vld [vmem:[%s1530_s1 + $0x40] sm:$0xff]   ;;  %v1287_v40 = vld [vmem:[%s1530_s1 + $0xf0] sm:$0xff]   ;;  %v1276_v42 = vld [vmem:[%s1530_s1 + $0x98] sm:$0xff]  }
  0x14   : > { %v425_v18 = vrot.slane %v423_v13, 1  ;;  %v430_v19 = vrot.slane %v428_v14, 1  ;;  %v1289_v43 = vld [vmem:[%s1530_s1 + $0xe8] sm:$0xff]   ;;  %v1278_v44 = vld [vmem:[%s1530_s1 + $0x90] sm:$0xff]   ;;  %v1291_v45 = vld [vmem:[%s1530_s1 + $0xe0] sm:$0xff]  }
  0x15   : > { %1144 = vmatpush3.bf16.msra.mxu0 %v1264_v5  ;;  %1156 = vmatpush3.bf16.msra.mxu1 %v1265_v11  ;;  %v1378_v22 = vsel %vm674_vm2, %v675_v16, %v676_v17  ;;  %v1280_v46 = vld [vmem:[%s1530_s1 + $0x88] sm:$0xff]   ;;  %v1282_v48 = vld [vmem:[%s1530_s1 + $0x80] sm:$0xff]   ;;  %v1284_v49 = vld [vmem:[%s1530_s1 + $0xd8] sm:$0xff]  }
  0x16   : > { %1145 = vmatprep.subr.bf16.mxu0 %v1304_v0  ;;  %1157 = vmatprep.subr.bf16.mxu1 %v1304_v0  ;;  %v426_v21 = vor.u32 %v425_v18, %v421_v12  ;;  %v1286_v50 = vld [vmem:[%s1530_s1 + $0xd0] sm:$0xff]   ;;  %v1288_v51 = vld [vmem:[%s1530_s1 + $0xc8] sm:$0xff]   ;;  %v1290_v52 = vld [vmem:[%s1530_s1 + $0xc0] sm:$0xff]  }
  0x17   : > { %338 = vrot.lane.b32.xlu0 %v171_v9, %s1307_s8  ;;  %v1292_v53 = vld [vmem:[%s1530_s1 + $0x118] sm:$0xff]   ;;  %v1293_v54 = vld [vmem:[%s1530_s1 + $0x110] sm:$0xff]   ;;  %v1294_v55 = vld [vmem:[%s1530_s1 + $0x108] sm:$0xff]  }
  0x18   : > { %v431_v23 = vsel %vm420_vm1, %v426_v21, %v430_v19  ;;  %v1295_v56 = vld [vmem:[%s1530_s1 + $0x100] sm:$0xff]  }
  0x19   : > { %1146 = vmatpush3.bf16.msra.mxu0 %v1266_v15  ;;  %1158 = vmatpush3.bf16.msra.mxu1 %v1267_v20 }
  0x1a   : > { %1163 = vmatprep.subr.bf16.mxu0 %v1304_v0  ;;  %511 = vrot.lane.b32.xlu1 %v431_v23, %s1306_s30 }
  0x1b   : > { %1175 = vmatprep.subr.bf16.mxu1 %v1304_v0  ;;  %757 = vrot.lane.b32.xlu0 %v1378_v22, %s1306_s30 }
  0x1c   : > { %1160 = vmatmul.mubr.msk.bf16.vlgmr.msra.gmra.mxu1 %vm216_vm3, %v171_v9 }
  0x1d   : > { %1176 = vmatpush3.bf16.msra.mxu1 %v1269_v24  ;;  %1183 = vmatprep.mubr.msk.bf16.mxu1 %vm1305_vm0, %v1304_v0 }
  0x1e   : > { %592 = vrot.lane.b32.xlu1 %v431_v23, %s1307_s8  ;;  %1177 = vmatprep.subr.bf16.mxu1 %v1304_v0 }
  0x21   : > { %1178 = vmatpush3.bf16.msra.mxu1 %v1271_v25 }
  0x22   : > { %838 = vrot.lane.b32.xlu1 %v1378_v22, %s1307_s8  ;;  %1179 = vmatprep.subr.bf16.mxu1 %v1304_v0 }
  0x25   : > { %1180 = vmatpush3.bf16.msra.mxu1 %v1273_v26 }
  0x26   : > { %1181 = vmatprep.subr.bf16.mxu1 %v1304_v0 }
  0x29   : > { %1182 = vmatpush3.bf16.msra.mxu1 %v1275_v27 }
  0x2a   : > { %1199 = vmatprep.subr.bf16.mxu1 %v1304_v0 }
  0x2c   : > { %1184 = vmatmul.mubr.msk.bf16.vlgmr.msra.gmra.mxu1 %vm216_vm3, %v431_v23 }
  0x2d   : > { %1200 = vmatpush3.bf16.msra.mxu1 %v1277_v28  ;;  %1207 = vmatprep.mubr.msk.bf16.mxu1 %vm1305_vm0, %v1304_v0 }
  0x2e   : > { %1201 = vmatprep.subr.bf16.mxu1 %v1304_v0 }
  0x31   : > { %1202 = vmatpush3.bf16.msra.mxu1 %v1279_v29 }
  0x32   : > { %1203 = vmatprep.subr.bf16.mxu1 %v1304_v0 }
  0x35   : > { %1204 = vmatpush3.bf16.msra.mxu1 %v1281_v30 }
  0x36   : > { %1205 = vmatprep.subr.bf16.mxu1 %v1304_v0 }
  0x39   : > { %1206 = vmatpush3.bf16.msra.mxu1 %v1283_v31 }
  0x3a   : > { %1223 = vmatprep.subr.bf16.mxu1 %v1304_v0 }
  0x85   : > { %v191_v33 = vpop.permute.xlu0 %190 }
  0x86   : > { %1148 = vmatmul.mubr.msk.bf16.vlgmr.msra.gmra.mxu0 %vm216_vm3, %v191_v33 }
  0x87   : > { %1164 = vmatpush3.bf16.msra.mxu0 %v1268_v32  ;;  %1171 = vmatprep.mubr.msk.bf16.mxu0 %vm1305_vm0, %v1304_v0 }
  0x88   : > { %1165 = vmatprep.subr.bf16.mxu0 %v1304_v0 }
  0x89   : > { %v339_v41 = vpop.permute.xlu0 %338 }
  0x8b   : > { %1166 = vmatpush3.bf16.msra.mxu0 %v1270_v34 }
  0x8c   : > { %1167 = vmatprep.subr.bf16.mxu0 %v1304_v0  ;;  %v512_v36 = vpop.permute.xlu1 %511 }
  0x8d   : > { %v758_v47 = vpop.permute.xlu0 %757 }
  0x8f   : > { %1168 = vmatpush3.bf16.msra.mxu0 %v1272_v35 }
  0x90   : > { %1169 = vmatprep.subr.bf16.mxu0 %v1304_v0  ;;  %v593_v39 = vpop.permute.xlu1 %592 }
  0x91   : > { %1208 = vmatmul.mubr.msk.bf16.vlgmr.msra.gmra.mxu1 %vm216_vm3, %v593_v39 }
  0x92   : > { %1224 = vmatpush3.bf16.msra.mxu1 %v1285_v37  ;;  %1231 = vmatprep.mubr.msk.bf16.mxu1 %vm1305_vm0, %v1304_v0 }
  0x93   : > { %1170 = vmatpush3.bf16.msra.mxu0 %v1274_v38  ;;  %1225 = vmatprep.subr.bf16.mxu1 %v1304_v0 }
  0x94   : > { %1187 = vmatprep.subr.bf16.mxu0 %v1304_v0  ;;  %v839_v57 = vpop.permute.xlu1 %838 }
  0x96   : > { %1172 = vmatmul.mubr.msk.bf16.vlgmr.msra.gmra.mxu0 %vm216_vm3, %v339_v41  ;;  %1226 = vmatpush3.bf16.msra.mxu1 %v1287_v40  ;;  %v1091_v41 = vld [vmem:[%s1531_s2] ss:$0 sm:$0xff] }
  0x97   : > { %1188 = vmatpush3.bf16.msra.mxu0 %v1276_v42  ;;  %1195 = vmatprep.mubr.msk.bf16.mxu0 %vm1305_vm0, %v1304_v0 }
  0x98   : > { %1189 = vmatprep.subr.bf16.mxu0 %v1304_v0  ;;  %1227 = vmatprep.subr.bf16.mxu1 %v1304_v0 }
  0x9a   : > { %1228 = vmatpush3.bf16.msra.mxu1 %v1289_v43 }
  0x9b   : > { %1190 = vmatpush3.bf16.msra.mxu0 %v1278_v44  ;;  %1229 = vmatprep.subr.bf16.mxu1 %v1304_v0 }
  0x9c   : > { %1191 = vmatprep.subr.bf16.mxu0 %v1304_v0 }
  0x9e   : > { %1230 = vmatpush3.bf16.msra.mxu1 %v1291_v45 }
  0x9f   : > { %1192 = vmatpush3.bf16.msra.mxu0 %v1280_v46 }
  0xa0   : > { %1193 = vmatprep.subr.bf16.mxu0 %v1304_v0 }
  0xa1   : > { %1232 = vmatmul.mubr.msk.bf16.vlgmr.msra.gmra.mxu1 %vm216_vm3, %v758_v47 }
  0xa3   : > { %1194 = vmatpush3.bf16.msra.mxu0 %v1282_v48 }
  0xa4   : > { %1211 = vmatprep.subr.bf16.mxu0 %v1304_v0 }
  0xa6   : > { %1196 = vmatmul.mubr.msk.bf16.vlgmr.msra.gmra.mxu0 %vm216_vm3, %v512_v36 }
  0xa7   : > { %1212 = vmatpush3.bf16.msra.mxu0 %v1284_v49  ;;  %1219 = vmatprep.mubr.msk.bf16.mxu0 %vm1305_vm0, %v1304_v0 }
  0xa8   : > { %1213 = vmatprep.subr.bf16.mxu0 %v1304_v0 }
  0xab   : > { %1214 = vmatpush3.bf16.msra.mxu0 %v1286_v50 }
  0xac   : > { %1215 = vmatprep.subr.bf16.mxu0 %v1304_v0 }
  0xaf   : > { %1216 = vmatpush3.bf16.msra.mxu0 %v1288_v51 }
  0xb0   : > { %1217 = vmatprep.subr.bf16.mxu0 %v1304_v0 }
  0xb3   : > { %1218 = vmatpush3.bf16.msra.mxu0 %v1290_v52 }
  0xb4   : > { %1235 = vmatprep.subr.bf16.mxu0 %v1304_v0 }
  0xb6   : > { %1220 = vmatmul.mubr.msk.bf16.vlgmr.msra.gmra.mxu0 %vm216_vm3, %v1378_v22 }
  0xb7   : > { %1236 = vmatpush3.bf16.msra.mxu0 %v1292_v53  ;;  %1243 = vmatprep.mubr.msk.bf16.mxu0 %vm1305_vm0, %v1304_v0 }
  0xb8   : > { %1237 = vmatprep.subr.bf16.mxu0 %v1304_v0 }
  0xbb   : > { %1238 = vmatpush3.bf16.msra.mxu0 %v1293_v54 }
  0xbc   : > { %1239 = vmatprep.subr.bf16.mxu0 %v1304_v0 }
  0xbf   : > { %1240 = vmatpush3.bf16.msra.mxu0 %v1294_v55 }
  0xc0   : > { %1241 = vmatprep.subr.bf16.mxu0 %v1304_v0 }
  0xc3   : > { %1242 = vmatpush3.bf16.msra.mxu0 %v1295_v56 }
  0xc6   : > { %1244 = vmatmul.mubr.msk.bf16.vlgmr.msra.gmra.mxu0 %vm216_vm3, %v839_v57 }
  0xdc   : > { %v322_v58 = vpop.f32.mrf.mxu1 }
  0xde   : > { %v1161_v59 = vpop.f32.mrf.mxu1 }
  0xe0   : > { %v325_v60 = vpop.f32.mrf.mxu1 }
  0xe2   : > { %v1162_v61 = vpop.f32.mrf.mxu1 }
  0xec   : > { %v493_v62 = vpop.f32.mrf.mxu1 }
  0xee   : > { %v1185_v63 = vpop.f32.mrf.mxu1 }
  0xf0   : > { %v496_v1 = vpop.f32.mrf.mxu1 }
  0xf2   : > { %v1186_v2 = vpop.f32.mrf.mxu1 }
 0x146   : > { %v254_v3 = vpop.f32.mrf.mxu0 }
 0x147   : > { %v323_v22 = vadd.f32 %v322_v58, %v254_v3 }
 0x148   : > { %v1149_v4 = vpop.f32.mrf.mxu0 }
 0x14a   : > { %v257_v5 = vpop.f32.mrf.mxu0 }
 0x14b   : > { %v326_v25 = vadd.f32 %v325_v60, %v257_v5 }
 0x14c   : > { %v1150_v6 = vpop.f32.mrf.mxu0 }
 0x151   : > { %v655_v7 = vpop.f32.mrf.mxu1 }
 0x153   : > { %v1209_v8 = vpop.f32.mrf.mxu1 }
 0x155   : > { %v658_v9 = vpop.f32.mrf.mxu1 }
 0x156   : > { %v401_v0 = vpop.f32.mrf.mxu0 }
 0x157   : > { %v1210_v10 = vpop.f32.mrf.mxu1  ;;  %v408_v23 = vadd.f32 %v401_v0, %v323_v22 }
 0x158   : > { %v1173_v11 = vpop.f32.mrf.mxu0 }
 0x159   : > { %v500_v27 = vadd.f32 %v493_v62, %v408_v23 }
 0x15a   : > { %v404_v12 = vpop.f32.mrf.mxu0 }
 0x15b   : > { %v409_v28 = vadd.f32 %v404_v12, %v326_v25 }
 0x15c   : > { %v1174_v13 = vpop.f32.mrf.mxu0 }
 0x15d   : > { %v501_v32 = vadd.f32 %v496_v1, %v409_v28 }
 0x161   : > { %v820_v14 = vpop.f32.mrf.mxu1 }
 0x163   : > { %v1233_v15 = vpop.f32.mrf.mxu1 }
 0x165   : > { %v823_v16 = vpop.f32.mrf.mxu1 }
 0x166   : > { %v574_v17 = vpop.f32.mrf.mxu0 }
 0x167   : > { %v1234_v18 = vpop.f32.mrf.mxu1  ;;  %v581_v30 = vadd.f32 %v574_v17, %v500_v27 }
 0x168   : > { %v1197_v19 = vpop.f32.mrf.mxu0 }
 0x169   : > { %v662_v33 = vadd.f32 %v655_v7, %v581_v30 }
 0x16a   : > { %v577_v20 = vpop.f32.mrf.mxu0 }
 0x16b   : > { %v582_v34 = vadd.f32 %v577_v20, %v501_v32 }
 0x16c   : > { %v1198_v21 = vpop.f32.mrf.mxu0 }
 0x16d   : > { %v663_v36 = vadd.f32 %v658_v9, %v582_v34 }
 0x176   : > { %v739_v24 = vpop.f32.mrf.mxu0 }
 0x177   : > { %v746_v35 = vadd.f32 %v739_v24, %v662_v33 }
 0x178   : > { %v1221_v26 = vpop.f32.mrf.mxu0 }
 0x179   : > { %v827_v37 = vadd.f32 %v820_v14, %v746_v35 }
 0x17a   : > { %v742_v29 = vpop.f32.mrf.mxu0 }
 0x17b   : > { %v747_v38 = vadd.f32 %v742_v29, %v663_v36 }
 0x17c   : > { %v1222_v31 = vpop.f32.mrf.mxu0 }
 0x17d   : > { %v828_v43 = vadd.f32 %v823_v16, %v747_v38 }
 0x186   : > { %v901_v39 = vpop.f32.mrf.mxu0 }
 0x187   : > { %v908_v40 = vadd.f32 %v901_v39, %v827_v37 }
 0x188   : > { %v1245_v42 = vpop.f32.mrf.mxu0 }
 0x189   : > { %v917_v45 = vadd.f32 %v1091_v41, %v908_v40 }
 0x18a   : > { %v904_v44 = vpop.f32.mrf.mxu0 }
 0x18b   : > { %v909_v46 = vadd.f32 %v904_v44, %v828_v43  ;;  %v919_v49 = vmax.f32 %v917_v45, 0.0 }
 0x18c   : > { %v1246_v47 = vpop.f32.mrf.mxu0 }
 0x18d   : > { %v918_v48 = vadd.f32 %v1091_v41, %v909_v46 }
 0x18f   : > { %v920_v50 = vmax.f32 %v918_v48, 0.0 }
 0x191   : > { %v921_v51 = vadd.f32 %v920_v50, %v919_v49 }
 0x193   : > { %v922_v52 = vrot.slane %v921_v51, 4 }
 0x195   : > { %v923_v53 = vadd.f32 %v922_v52, %v921_v51 }
 0x197   : > { %v924_v54 = vrot.slane %v923_v53, 2 }
 0x199   : > { %v925_v55 = vadd.f32 %v924_v54, %v923_v53 }
 0x19b   : > { %v926_v56 = vrot.slane %v925_v55, 1 }
 0x19d   : > { %v927_v57 = vadd.f32 %v926_v56, %v925_v55 }
 0x19f   : > { %928 = vst [vmem:[%s166_s21] sm:$0x1] %v927_v57 }
 0x1a0 PF: > { %s13_s12 = sadd.s32 1, %s1302_s12  }
 0x1a1   : > { %p10_p4 = scmp.ge.s32.totalorder %s13_s12, 4  }
 0x1a3   :  { %12 = sbr.rel (!%p10_p4) target bundleno = 1 (0x1), region = 70 }

</bundles_post_ra>
